<compile_context>
chip_gen: v7x
topology: tpu7x:2x2x1
jax: 0.10.0
libtpu: 0.0.40
codegen_flags: <defaults>
</compile_context>

<pallas_src>
import functools

import jax
import jax.numpy as jnp
from jax.experimental import pallas as pl
from jax.experimental.pallas import tpu as pltpu


def _label_embed_kernel(labels_ref, drop_ref, table_ref, out_ref, *,
                        num_classes, v_pad):
    tb = out_ref.shape[0]
    labels = labels_ref[...]                                   # (TB, 1) int32
    drops = drop_ref[...]                                      # (TB, 1) int32
    # CFG token_drop folded in-kernel: dropped rows point at the null class.
    final = jnp.where(drops != 0, jnp.int32(num_classes), labels)   # (TB, 1)
    # One-hot gather on the MXU against the VMEM-resident (padded) table.
    classes = jax.lax.broadcasted_iota(jnp.int32, (tb, v_pad), 1)
    onehot = (final == classes).astype(table_ref.dtype)        # (TB, V_pad)
    out_ref[...] = jnp.dot(
        onehot, table_ref[...],
        preferred_element_type=jnp.float32,
        precision=jax.lax.Precision.HIGHEST,
    ).astype(out_ref.dtype)


@functools.partial(jax.jit, static_argnames=("num_classes",))
def _embedding_gather(labels, drop_bits, table, *, num_classes):
    """Gather rows of `table` at (possibly dropped) `labels` via Pallas."""
    B = labels.shape[0]
    V, H = table.shape

    # Pad vocab to a lane multiple for the one-hot matmul; padded rows are 0.
    v_pad = max(128, ((V + 127) // 128) * 128)
    table_p = jnp.zeros((v_pad, H), table.dtype).at[:V].set(table)

    # Batch tile: multiple of 8 (sublane-dense), up to 256 rows per grid step.
    tb = min(256, ((B + 7) // 8) * 8)
    b_pad = ((B + tb - 1) // tb) * tb
    labels_p = jnp.zeros((b_pad, 1), jnp.int32).at[:B, 0].set(
        labels.astype(jnp.int32))
    drop_p = jnp.zeros((b_pad, 1), jnp.int32).at[:B, 0].set(
        drop_bits.astype(jnp.int32))

    kernel = functools.partial(
        _label_embed_kernel, num_classes=num_classes, v_pad=v_pad)

    out = pl.pallas_call(
        kernel,
        out_shape=jax.ShapeDtypeStruct((b_pad, H), table.dtype),
        grid_spec=pl.GridSpec(
            grid=(b_pad // tb,),
            in_specs=[
                pl.BlockSpec((tb, 1), lambda i: (i, 0)),       # labels
                pl.BlockSpec((tb, 1), lambda i: (i, 0)),       # drop bits
                pl.BlockSpec((v_pad, H), lambda i: (0, 0)),    # resident table
            ],
            out_specs=pl.BlockSpec((tb, H), lambda i: (i, 0)),
        ),
        compiler_params=pltpu.CompilerParams(
            dimension_semantics=("parallel",),
        ),
    )(labels_p, drop_p, table_p)
    return out[:B]


def label_embedder_forward(
    labels,
    embedding_table,
    *,
    num_classes,
    dropout_prob,
    train,
    dropout_key=None,
    force_drop_ids=None,
):
    """Mirrors LabelEmbedder.forward(labels, train, force_drop_ids)."""
    B = labels.shape[0]
    use_dropout = dropout_prob > 0
    if (train and use_dropout) or (force_drop_ids is not None):
        if force_drop_ids is None:
            drop_bits = jax.random.uniform(dropout_key, (B,)) < dropout_prob
        else:
            drop_bits = force_drop_ids == 1
        drop_bits = drop_bits.astype(jnp.int32)
    else:
        drop_bits = jnp.zeros((B,), jnp.int32)
    # TODO(synk): if dropout_prob == 0 but force_drop_ids is given, the
    # reference PyTorch indexes past the table (an error); here the padded
    # zero rows yield a zero embedding instead.
    return _embedding_gather(labels, drop_bits, embedding_table,
                             num_classes=num_classes)


if __name__ == "__main__":
    num_classes = 10
    hidden_size = 128
    dropout_prob = 0.1
    batch = 8

    key = jax.random.PRNGKey(0)
    k_table, k_labels, k_drop = jax.random.split(key, 3)

    # nn.Embedding(num_classes + use_cfg_embedding, hidden_size) weights.
    use_cfg_embedding = 1 if dropout_prob > 0 else 0
    table = (
        jax.random.normal(
            k_table, (num_classes + use_cfg_embedding, hidden_size), jnp.float32
        )
        * 0.02
    )
    labels = jax.random.randint(k_labels, (batch,), 0, num_classes, jnp.int32)

    # Eval path (train=False): pure embedding lookup, deterministic.
    out_eval = label_embedder_forward(
        labels,
        table,
        num_classes=num_classes,
        dropout_prob=dropout_prob,
        train=False,
    )
    out_eval = jax.block_until_ready(out_eval)
    ref_eval = table[labels]
    assert out_eval.shape == (batch, hidden_size)
    assert jnp.allclose(out_eval, ref_eval, atol=1e-6, rtol=1e-6)

    # Train path: exercises token_drop (CFG label dropout) + gather.
    out_train = label_embedder_forward(
        labels,
        table,
        num_classes=num_classes,
        dropout_prob=dropout_prob,
        train=True,
        dropout_key=k_drop,
    )
    out_train = jax.block_until_ready(out_train)
    drop_ids = jax.random.uniform(k_drop, (batch,)) < dropout_prob
    dropped_labels = jnp.where(drop_ids, num_classes, labels)
    ref_train = table[dropped_labels]
    assert jnp.allclose(out_train, ref_train, atol=1e-6, rtol=1e-6)

    # force_drop_ids path: every label replaced by the CFG "null" class.
    force_ids = jnp.ones((batch,), jnp.int32)
    out_forced = label_embedder_forward(
        labels,
        table,
        num_classes=num_classes,
        dropout_prob=dropout_prob,
        train=False,
        force_drop_ids=force_ids,
    )
    out_forced = jax.block_until_ready(out_forced)
    assert jnp.allclose(
        out_forced,
        jnp.broadcast_to(table[num_classes], out_forced.shape),
        atol=1e-6,
        rtol=1e-6,
    )

    print("KERNEL_OK")
</pallas_src>

<mosaic_0001>
module attributes {stable_mosaic.version = 11 : i64} {
  func.func @_label_embed_kernel(%arg0: i32, %arg1: memref<8x1xi32, #tpu.memory_space<vmem>>, %arg2: memref<8x1xi32, #tpu.memory_space<vmem>>, %arg3: memref<128x128xf32, #tpu.memory_space<vmem>>, %arg4: memref<8x128xf32, #tpu.memory_space<vmem>>) attributes {dimension_semantics = [#tpu.dimension_semantics<parallel>], iteration_bounds = array<i64: 1>, scalar_prefetch = 0 : i64, scratch_operands = 0 : i64, tpu.core_type = #tpu.core_type<tc>, window_params = [{transform_indices = @transform_0, window_bounds = array<i64: 8, 1>}, {transform_indices = @transform_1, window_bounds = array<i64: 8, 1>}, {pipeline_mode = #tpu.pipeline_mode<synchronous>, transform_indices = @transform_2, window_bounds = array<i64: 128, 128>}, {transform_indices = @transform_3, window_bounds = array<i64: 8, 128>}]} {
    %c0 = arith.constant 0 : index
    %c0_0 = arith.constant 0 : index
    %0 = vector.load %arg1[%c0, %c0_0] : memref<8x1xi32, #tpu.memory_space<vmem>>, vector<8x1xi32>
    %c0_1 = arith.constant 0 : index
    %c0_2 = arith.constant 0 : index
    %1 = vector.load %arg2[%c0_1, %c0_2] : memref<8x1xi32, #tpu.memory_space<vmem>>, vector<8x1xi32>
    %c0_i32 = arith.constant 0 : i32
    %2 = vector.broadcast %c0_i32 : i32 to vector<8x1xi32>
    %3 = arith.cmpi ne, %1, %2 : vector<8x1xi32>
    %c10_i32 = arith.constant 10 : i32
    %4 = vector.broadcast %c10_i32 : i32 to vector<8x1xi32>
    %5 = arith.select %3, %4, %0 : vector<8x1xi1>, vector<8x1xi32>
    %6 = tpu.iota {dimensions = array<i32: 1>} : vector<8x128xi32>
    %7 = vector.broadcast %5 : vector<8x1xi32> to vector<8x128xi32>
    %8 = arith.cmpi eq, %7, %6 : vector<8x128xi32>
    %9 = arith.extui %8 : vector<8x128xi1> to vector<8x128xi32>
    %10 = arith.sitofp %9 : vector<8x128xi32> to vector<8x128xf32>
    %c0_3 = arith.constant 0 : index
    %c0_4 = arith.constant 0 : index
    %11 = vector.load %arg3[%c0_3, %c0_4] : memref<128x128xf32, #tpu.memory_space<vmem>>, vector<128x128xf32>
    %cst = arith.constant dense<0.000000e+00> : vector<8x128xf32>
    %12 = tpu.matmul %10, %11, %cst {dimension_numbers = #tpu.dot_dimension_numbers<[1], [0], [0], [1], [0, 0, 1, 1], [], []>, precision = #tpu.contract_precision<fp32>} : vector<8x128xf32>, vector<128x128xf32>, vector<8x128xf32> -> vector<8x128xf32>
    %c0_5 = arith.constant 0 : index
    %c0_6 = arith.constant 0 : index
    %13 = vector.load %arg4[%c0_5, %c0_6] : memref<8x128xf32, #tpu.memory_space<vmem>>, vector<8x128xf32>
    tpu.vector_store %arg4[%c0_5, %c0_6], %12 {strides = array<i32>} : memref<8x128xf32, #tpu.memory_space<vmem>>, vector<8x128xf32>,
    return
  }
  func.func @transform_0(%arg0: i32) -> (i32, i32) {
    %c0_i32 = arith.constant 0 : i32
    %c0_i32_0 = arith.constant 0 : i32
    return %arg0, %c0_i32 : i32, i32
  }
  func.func @transform_1(%arg0: i32) -> (i32, i32) {
    %c0_i32 = arith.constant 0 : i32
    %c0_i32_0 = arith.constant 0 : i32
    return %arg0, %c0_i32 : i32, i32
  }
  func.func @transform_2(%arg0: i32) -> (i32, i32) {
    %c0_i32 = arith.constant 0 : i32
    %c0_i32_0 = arith.constant 0 : i32
    %c0_i32_1 = arith.constant 0 : i32
    return %c0_i32, %c0_i32_0 : i32, i32
  }
  func.func @transform_3(%arg0: i32) -> (i32, i32) {
    %c0_i32 = arith.constant 0 : i32
    %c0_i32_0 = arith.constant 0 : i32
    return %arg0, %c0_i32 : i32, i32
  }
}

</mosaic_0001>

<bundles_post_ra>
// kernel: _embedding_gather.1
= control target key start
LH: loop header
LB: loop body
LE: loop exit
PB: predicated region body
PF: predicated region fallthrough
CT: control target
= control target key end

     0   :  { %v1199_v3 = vmov 0   ;;  %v1200_v4 = vmov 0.0|0.0   ;;  %s1601_s0 = inlined_call_operand.vmem [shape: s32[8,1], index: 0, kind: input, shape index: {}]   ;;  %s1602_s1 = inlined_call_operand.vmem [shape: s32[8,1], index: 1, kind: input, shape index: {}]   ;;  %s1603_s2 = inlined_call_operand.vmem [shape: f32[128,128], index: 2, kind: input, shape index: {}]   ;;  %s1604_s3 = inlined_call_operand.hbm [shape: f32[8,128], index: 3, kind: output, shape index: {}]  }
   0x1   :  { %v15_v0 = vld [vmem:[%s1601_s0] sm:$0xff]  ;;  %1174 = vset.pattern.permute.xlu0 %v1199_v3  ;;  %1087 = vmatprep.subr.bf16.mxu0 %v1200_v4  ;;  %v28_v5 = vld [vmem:[%s1603_s2 + $0x8] sm:$0xff]  ;;  %v29_v7 = vld [vmem:[%s1603_s2 + $0x10] sm:$0xff] }
   0x2   :  { %v16_v1 = vld [vmem:[%s1602_s1] sm:$0xff]  ;;  %v30_v8 = vld [vmem:[%s1603_s2 + $0x18] sm:$0xff]  ;;  %v47_v10 = vand.u32 4294901760, %v28_v5  ;;  %1015 = vmatprep.subr.bf16.mxu1 %v1200_v4  ;;  %v50_v11 = vand.u32 4294901760, %v29_v7  ;;  %v32_v14 = vld [vmem:[%s1603_s2 + $0x28] sm:$0xff] }
   0x3   :  { %v27_v2 = vld [vmem:[%s1603_s2] sm:$0xff]  ;;  %vm17_vm0 = vcmp.ne.s32.totalorder %v16_v1, 0  ;;  %v53_v12 = vand.u32 4294901760, %v30_v8  ;;  %v59_v17 = vand.u32 4294901760, %v32_v14  ;;  %v33_v18 = vld [vmem:[%s1603_s2 + $0x30] sm:$0xff]  ;;  %v34_v19 = vld [vmem:[%s1603_s2 + $0x38] sm:$0xff] }
   0x4   :  { %v44_v6 = vand.u32 4294901760, %v27_v2  ;;  %v18_v9 = vsel %vm17_vm0, 10, %v15_v0  ;;  %v31_v13 = vld [vmem:[%s1603_s2 + $0x20] sm:$0xff]  ;;  %v1261_v21 = vsub.f32 %v28_v5, %v47_v10  ;;  %v1263_v22 = vsub.f32 %v29_v7, %v50_v11  ;;  %v1273_v24 = vld [vmem:[%s1603_s2 + $0x48] sm:$0xff]  ;;  %v1278_v25 = vld [vmem:[%s1603_s2 + $0x50] sm:$0xff] }
   0x5   :  { %22 = vperm.xlu0 %1174, %v18_v9   ;;  %v56_v16 = vand.u32 4294901760, %v31_v13  ;;  %v1268_v23 = vld [vmem:[%s1603_s2 + $0x40] sm:$0xff]  ;;  %v1280_v26 = vsub.f32 %v30_v8, %v53_v12  ;;  %v1284_v28 = vsub.f32 %v32_v14, %v59_v17  ;;  %v1289_v29 = vld [vmem:[%s1603_s2 + $0x58] sm:$0xff]  ;;  %v1298_v31 = vpack.c.bf16 %v53_v12, %v50_v11  ;;  %v1303_v34 = vld [vmem:[%s1603_s2 + $0x68] sm:$0xff] }
   0x6   :  { %v1251_v15 = vsub.f32 %v27_v2, %v44_v6  ;;  %v1259_v20 = vpack.c.bf16 %v47_v10, %v44_v6  ;;  %v1294_v30 = vld [vmem:[%s1603_s2 + $0x60] sm:$0xff]  ;;  %v62_v32 = vand.u32 4294901760, %v33_v18  ;;  %v65_v33 = vand.u32 4294901760, %v34_v19  ;;  %v1313_v38 = vld [vmem:[%s1603_s2 + $0x70] sm:$0xff] }
   0x7   :  { %v1282_v27 = vsub.f32 %v31_v13, %v56_v16  ;;  %v68_v35 = vand.u32 4294901760, %v1268_v23  ;;  %v71_v36 = vand.u32 4294901760, %v1273_v24  ;;  %v74_v37 = vand.u32 4294901760, %v1278_v25 }
   0x8   :  { %1089 = vmatpush3.bf16.msra.mxu0 %v1259_v20  ;;  %1017 = vmatpush3.bf16.msra.mxu1 %v1259_v20 }
   0x9   :  { %1090 = vmatprep.subr.bf16.mxu0 %v1200_v4  ;;  %1018 = vmatprep.subr.bf16.mxu1 %v1200_v4 }
   0xa   :  { %8 = vsyncpa [#allocation3], 0  ;;  %v1315_v39 = vsub.f32 %v33_v18, %v62_v32  ;;  %v1317_v40 = vsub.f32 %v34_v19, %v65_v33  ;;  %v77_v41 = vand.u32 4294901760, %v1289_v29  ;;  %v80_v42 = vand.u32 4294901760, %v1294_v30  ;;  %v1324_v43 = vld [vmem:[%s1603_s2 + $0x78] sm:$0xff]  ;;  %s1204_s2 = smov [#allocation2]  }
   0xb   :  { %v1327_v44 = vsub.f32 %v1268_v23, %v68_v35  ;;  %v1330_v45 = vsub.f32 %v1273_v24, %v71_v36  ;;  %v1335_v46 = vsub.f32 %v1278_v25, %v74_v37  ;;  %v83_v47 = vand.u32 4294901760, %v1303_v34  ;;  %s691_s19 = sshll.u32 %s1204_s2, 4  ;;  %s692_s19 = int_to_ptr.vmem [resolvable:$true] %s691_s19 }
   0xc   :  { %1092 = vmatpush3.bf16.msra.mxu0 %v1298_v31  ;;  %1020 = vmatpush3.bf16.msra.mxu1 %v1298_v31  ;;  %v1340_v48 = vpack.c.bf16 %v59_v17, %v56_v16  ;;  %v1343_v49 = vsub.f32 %v1289_v29, %v77_v41  ;;  %v1348_v50 = vsub.f32 %v1294_v30, %v80_v42  ;;  %v86_v51 = vand.u32 4294901760, %v1313_v38  ;;  %s1175_s0 = scalar_lea.vmem %s692_s19, 128  ;;  %p1180_p1 = scmp.lt.s32.totalorder %s692_s19, %s692_s19 }
   0xd   :  { %1093 = vmatprep.subr.bf16.mxu0 %v1200_v4  ;;  %1021 = vmatprep.subr.bf16.mxu1 %v1200_v4  ;;  %v1356_v52 = vsub.f32 %v1303_v34, %v83_v47  ;;  %v89_v53 = vand.u32 4294901760, %v1324_v43  ;;  %v137_v54 = vand.u32 4294901760, %v1251_v15  ;;  %vm1201_vm1 = vmmov 0   ;;  %p1176_p0 = scmp.ne.s32.totalorder %s692_s19, %s1175_s0  ;;  %p1181_p2 = scmp.lt.s32.totalorder %s1175_s0, %s1175_s0 }
   0xe   :  { %v1363_v55 = vsub.f32 %v1313_v38, %v86_v51  ;;  %v1202_v56 = vmov 0.0   ;;  %v144_v57 = vand.u32 4294901760, %v1261_v21  ;;  %v151_v58 = vand.u32 4294901760, %v1263_v22 }
   0xf   :  { %942 = vmatprep.mubr.msk.f32.mxu0 %vm1201_vm1, %v1202_v56  ;;  %837 = vmatprep.mubr.msk.f32.mxu1 %vm1201_vm1, %v1202_v56  ;;  %v158_v59 = vand.u32 4294901760, %v1280_v26  ;;  %v1372_v60 = vpack.c.bf16 %v65_v33, %v62_v32  ;;  %v1377_v61 = vsub.f32 %v1324_v43, %v89_v53  ;;  %v138_v62 = vsub.f32 %v1251_v15, %v137_v54  ;;  %p1182_p3 = por %p1181_p2, %p1180_p1 }
  0x10   :  { %1095 = vmatpush3.bf16.msra.mxu0 %v1340_v48  ;;  %1023 = vmatpush3.bf16.msra.mxu1 %v1340_v48  ;;  %v1382_v63 = vpack.c.bf16 %v144_v57, %v137_v54  ;;  %v145_v0 = vsub.f32 %v1261_v21, %v144_v57  ;;  %v165_v2 = vand.u32 4294901760, %v1282_v27  ;;  %v152_v5 = vsub.f32 %v1263_v22, %v151_v58 }
  0x11   :  { %v1385_v1 = vpack.c.bf16 %v158_v59, %v151_v58  ;;  %1096 = vmatprep.subr.bf16.mxu0 %v1200_v4  ;;  %1024 = vmatprep.subr.bf16.mxu1 %v1200_v4  ;;  %v139_v3 = vand.u32 4294901760, %v138_v62  ;;  %v159_v6 = vsub.f32 %v1280_v26, %v158_v59  ;;  %v172_v7 = vand.u32 4294901760, %v1284_v28  ;;  %p1183_p4 = pnand %p1182_p3, %p1176_p0 }
  0x12   :  { %v1393_v8 = vpack.c.bf16 %v71_v36, %v68_v35  ;;  %v146_v9 = vand.u32 4294901760, %v145_v0  ;;  %v166_v10 = vsub.f32 %v1282_v27, %v165_v2  ;;  %v153_v11 = vand.u32 4294901760, %v152_v5 }
  0x13   :  { %v160_v12 = vand.u32 4294901760, %v159_v6  ;;  %v1396_v13 = vpack.c.bf16 %v172_v7, %v165_v2  ;;  %v173_v14 = vsub.f32 %v1284_v28, %v172_v7  ;;  %v179_v18 = vand.u32 4294901760, %v1315_v39 }
  0x14   :  { %1098 = vmatpush3.bf16.msra.mxu0 %v1372_v60  ;;  %1026 = vmatpush3.bf16.msra.mxu1 %v1372_v60  ;;  %v1401_v16 = vpack.c.bf16 %v146_v9, %v139_v3  ;;  %v167_v17 = vand.u32 4294901760, %v166_v10  ;;  %v186_v19 = vand.u32 4294901760, %v1317_v40  ;;  %v1415_v35 = vpack.c.bf16 %v77_v41, %v74_v37 }
  0x15   :  { %1099 = vmatprep.subr.bf16.mxu0 %v1200_v4  ;;  %1027 = vmatprep.subr.bf16.mxu1 %v1200_v4  ;;  %v1407_v23 = vpack.c.bf16 %v160_v12, %v153_v11  ;;  %v174_v24 = vand.u32 4294901760, %v173_v14  ;;  %v180_v32 = vsub.f32 %v1315_v39, %v179_v18  ;;  %v193_v58 = vand.u32 4294901760, %v1327_v44 }
  0x16   :  { %v1409_v29 = vpack.c.bf16 %v186_v19, %v179_v18  ;;  %v187_v33 = vsub.f32 %v1317_v40, %v186_v19  ;;  %v200_v59 = vand.u32 4294901760, %v1330_v45  ;;  %v1435_v0 = vpack.c.bf16 %v83_v47, %v80_v42 }
  0x17   :  { %v1417_v36 = vpack.c.bf16 %v174_v24, %v167_v17  ;;  %v181_v54 = vand.u32 4294901760, %v180_v32  ;;  %v194_v37 = vsub.f32 %v1327_v44, %v193_v58  ;;  %v207_v5 = vand.u32 4294901760, %v1335_v46 }
  0x18   :  { %1101 = vmatpush3.bf16.msra.mxu0 %v1393_v8  ;;  %1029 = vmatpush3.bf16.msra.mxu1 %v1393_v8  ;;  %v188_v57 = vand.u32 4294901760, %v187_v33  ;;  %v1427_v25 = vpack.c.bf16 %v200_v59, %v193_v58  ;;  %v201_v41 = vsub.f32 %v1330_v45, %v200_v59  ;;  %v214_v6 = vand.u32 4294901760, %v1343_v49 }
  0x19   :  { %1102 = vmatprep.subr.bf16.mxu0 %v1200_v4  ;;  %1030 = vmatprep.subr.bf16.mxu1 %v1200_v4  ;;  %v195_v2 = vand.u32 4294901760, %v194_v37  ;;  %v208_v34 = vsub.f32 %v1335_v46, %v207_v5  ;;  %v1453_v47 = vpack.c.bf16 %v89_v53, %v86_v51  ;;  %v221_v11 = vand.u32 4294901760, %v1348_v50 }
  0x1a   :  { %v1425_v62 = vpack.c.bf16 %v188_v57, %v181_v54  ;;  %v202_v3 = vand.u32 4294901760, %v201_v41  ;;  %v1445_v30 = vpack.c.bf16 %v214_v6, %v207_v5  ;;  %v215_v42 = vsub.f32 %v1343_v49, %v214_v6 }
  0x1b   :  { %v209_v9 = vand.u32 4294901760, %v208_v34  ;;  %v228_v12 = vand.u32 4294901760, %v1356_v52  ;;  %v222_v43 = vsub.f32 %v1348_v50, %v221_v11  ;;  %v235_v18 = vand.u32 4294901760, %v1363_v55 }
  0x1c   :  { %1104 = vmatpush3.bf16.msra.mxu0 %v1415_v35  ;;  %1032 = vmatpush3.bf16.msra.mxu1 %v1415_v35  ;;  %v1443_v7 = vpack.c.bf16 %v202_v3, %v195_v2  ;;  %v216_v10 = vand.u32 4294901760, %v215_v42  ;;  %v242_v19 = vand.u32 4294901760, %v1377_v61  ;;  %v1064_v37 = vpack.c.bf16 %v1261_v21, %v1251_v15 }
  0x1d   :  { %1105 = vmatprep.subr.bf16.mxu0 %v1200_v4  ;;  %1033 = vmatprep.subr.bf16.mxu1 %v1200_v4  ;;  %v1130_v38 = vpack.c.bf16 %v228_v12, %v221_v11  ;;  %v229_v51 = vsub.f32 %v1356_v52, %v228_v12  ;;  %v223_v53 = vand.u32 4294901760, %v222_v43  ;;  %v236_v33 = vsub.f32 %v1363_v55, %v235_v18 }
  0x1e   :  { %v1055_v14 = vpack.c.bf16 %v216_v10, %v209_v9  ;;  %v1133_v32 = vpack.c.bf16 %v242_v19, %v235_v18  ;;  %v243_v54 = vsub.f32 %v1377_v61, %v242_v19  ;;  %v1067_v41 = vpack.c.bf16 %v1280_v26, %v1263_v22 }
  0x1f   :  { %v230_v17 = vand.u32 4294901760, %v229_v51  ;;  %v237_v57 = vand.u32 4294901760, %v236_v33  ;;  %v1070_v2 = vpack.c.bf16 %v1284_v28, %v1282_v27  ;;  %v1073_v3 = vpack.c.bf16 %v1317_v40, %v1315_v39 }
  0x20   :  { %1107 = vmatpush3.bf16.msra.mxu0 %v1435_v0  ;;  %1035 = vmatpush3.bf16.msra.mxu1 %v1435_v0  ;;  %v244_v58 = vand.u32 4294901760, %v243_v54  ;;  %v1076_v5 = vpack.c.bf16 %v1330_v45, %v1327_v44  ;;  %v1079_v6 = vpack.c.bf16 %v1343_v49, %v1335_v46  ;;  %v1082_v34 = vpack.c.bf16 %v1356_v52, %v1348_v50 }
  0x21   :  { %1108 = vmatprep.subr.bf16.mxu0 %v1200_v4  ;;  %1036 = vmatprep.subr.bf16.mxu1 %v1200_v4  ;;  %v1058_v24 = vpack.c.bf16 %v230_v17, %v223_v53  ;;  %v1085_v15 = vpack.c.bf16 %v1377_v61, %v1363_v55  ;;  %v19_v21 = vlaneseq }
  0x22   :  { %v1061_v59 = vpack.c.bf16 %v244_v58, %v237_v57 }
  0x23   :  { %v1487_v42 = vand.u32 127, %v19_v21 }
  0x24   :  { %1110 = vmatpush3.bf16.msra.mxu0 %v1453_v47  ;;  %1038 = vmatpush3.bf16.msra.mxu1 %v1453_v47 }
  0x25   :  { %1111 = vmatprep.subr.bf16.mxu0 %v1200_v4  ;;  %1039 = vmatprep.subr.bf16.mxu1 %v1200_v4 }
  0x84   :  { %v1489_v9 = vpop.permute.xlu0 %22 }
  0x85   :  { %vm24_vm2 = vcmp.eq.s32.totalorder %v1489_v9, %v1487_v42 }
  0x86   :  { %v699_v10 = vsel %vm24_vm2, 1.0, %v1202_v56 }
  0x87   :  { %v1497_v11 = vsub.f32 %v699_v10, %v699_v10 }
  0x89   :  { %v126_v12 = vand.u32 4294901760, %v1497_v11 }
  0x8b   :  { %943 = vmatmul.mubr.f32.vlgmr.msra.gmra.mrb[0].mxu0 %v126_v12  ;;  %v127_v43 = vsub.f32 %v1497_v11, %v126_v12 }
  0x8c   :  { %1113 = vmatpush3.bf16.msra.mxu0 %v1382_v63  ;;  %977 = vmatprep.mubr.msk.f32.mxu0 %vm1201_vm1, %v1202_v56  ;;  %v1203_v63 = vmov 1.0  }
  0x8d   :  { %1114 = vmatprep.subr.bf16.mxu0 %v1200_v4  ;;  %v128_v51 = vand.u32 4294901760, %v127_v43 }
  0x8f   :  { %838 = vmatmul.mubr.f32.vlgmr.msra.gmra.mrb[0].mxu1 %v128_v51 }
  0x90   :  { %1041 = vmatpush3.bf16.msra.mxu1 %v1401_v16  ;;  %1116 = vmatpush3.bf16.msra.mxu0 %v1385_v1 }
  0x91   :  { %1042 = vmatprep.subr.bf16.mxu1 %v1200_v4  ;;  %1117 = vmatprep.subr.bf16.mxu0 %v1200_v4 }
  0x92   :  { %872 = vmatprep.mubr.msk.f32.mxu1 %vm1201_vm1, %v1202_v56 }
  0x94   :  { %1044 = vmatpush3.bf16.msra.mxu1 %v1407_v23  ;;  %1119 = vmatpush3.bf16.msra.mxu0 %v1396_v13 }
  0x95   :  { %1045 = vmatprep.subr.bf16.mxu1 %v1200_v4  ;;  %1120 = vmatprep.subr.bf16.mxu0 %v1200_v4 }
  0x98   :  { %1047 = vmatpush3.bf16.msra.mxu1 %v1417_v36  ;;  %1122 = vmatpush3.bf16.msra.mxu0 %v1409_v29 }
  0x99   :  { %1048 = vmatprep.subr.bf16.mxu1 %v1200_v4  ;;  %1123 = vmatprep.subr.bf16.mxu0 %v1200_v4 }
  0x9c   :  { %1050 = vmatpush3.bf16.msra.mxu1 %v1425_v62  ;;  %1125 = vmatpush3.bf16.msra.mxu0 %v1427_v25 }
  0x9d   :  { %1051 = vmatprep.subr.bf16.mxu1 %v1200_v4  ;;  %1126 = vmatprep.subr.bf16.mxu0 %v1200_v4 }
  0xa0   :  { %1053 = vmatpush3.bf16.msra.mxu1 %v1443_v7  ;;  %1128 = vmatpush3.bf16.msra.mxu0 %v1445_v30 }
  0xa1   :  { %1054 = vmatprep.subr.bf16.mxu1 %v1200_v4  ;;  %1129 = vmatprep.subr.bf16.mxu0 %v1200_v4 }
  0xa4   :  { %1056 = vmatpush3.bf16.msra.mxu1 %v1055_v14  ;;  %1131 = vmatpush3.bf16.msra.mxu0 %v1130_v38 }
  0xa5   :  { %1057 = vmatprep.subr.bf16.mxu1 %v1200_v4  ;;  %1132 = vmatprep.subr.bf16.mxu0 %v1200_v4 }
  0xa8   :  { %1059 = vmatpush3.bf16.msra.mxu1 %v1058_v24  ;;  %1134 = vmatpush3.bf16.msra.mxu0 %v1133_v32 }
  0xa9   :  { %1060 = vmatprep.subr.bf16.mxu1 %v1200_v4  ;;  %1135 = vmatprep.subr.bf16.mxu0 %v1200_v4 }
  0xab   :  { %978 = vmatmul.mubr.msk.f32.vlgmr.msra.gmra.mrb[0].mxu0 %vm24_vm2, %v1203_v63 }
  0xac   :  { %1062 = vmatpush3.bf16.msra.mxu1 %v1061_v59  ;;  %1137 = vmatpush3.bf16.msra.mxu0 %v1259_v20 }
  0xad   :  { %1063 = vmatprep.subr.bf16.mxu1 %v1200_v4  ;;  %1138 = vmatprep.subr.bf16.mxu0 %v1200_v4 }
  0xae   :  { %1012 = vmatprep.mubr.msk.f32.mxu0 %vm1201_vm1, %v1202_v56 }
  0xaf   :  { %873 = vmatmul.mubr.msk.f32.vlgmr.msra.gmra.mrb[0].mxu1 %vm24_vm2, %v1203_v63 }
  0xb0   :  { %1065 = vmatpush3.bf16.msra.mxu1 %v1064_v37  ;;  %1140 = vmatpush3.bf16.msra.mxu0 %v1298_v31 }
  0xb1   :  { %1066 = vmatprep.subr.bf16.mxu1 %v1200_v4  ;;  %1141 = vmatprep.subr.bf16.mxu0 %v1200_v4 }
  0xb2   :  { %907 = vmatprep.mubr.msk.f32.mxu1 %vm1201_vm1, %v1202_v56 }
  0xb4   :  { %1068 = vmatpush3.bf16.msra.mxu1 %v1067_v41  ;;  %1143 = vmatpush3.bf16.msra.mxu0 %v1340_v48 }
  0xb5   :  { %1069 = vmatprep.subr.bf16.mxu1 %v1200_v4  ;;  %1144 = vmatprep.subr.bf16.mxu0 %v1200_v4 }
  0xb8   :  { %1071 = vmatpush3.bf16.msra.mxu1 %v1070_v2  ;;  %1146 = vmatpush3.bf16.msra.mxu0 %v1372_v60 }
  0xb9   :  { %1072 = vmatprep.subr.bf16.mxu1 %v1200_v4  ;;  %1147 = vmatprep.subr.bf16.mxu0 %v1200_v4 }
  0xbc   :  { %1074 = vmatpush3.bf16.msra.mxu1 %v1073_v3  ;;  %1149 = vmatpush3.bf16.msra.mxu0 %v1393_v8 }
  0xbd   :  { %1075 = vmatprep.subr.bf16.mxu1 %v1200_v4  ;;  %1150 = vmatprep.subr.bf16.mxu0 %v1200_v4 }
  0xc0   :  { %1077 = vmatpush3.bf16.msra.mxu1 %v1076_v5  ;;  %1152 = vmatpush3.bf16.msra.mxu0 %v1415_v35 }
  0xc1   :  { %1078 = vmatprep.subr.bf16.mxu1 %v1200_v4  ;;  %1153 = vmatprep.subr.bf16.mxu0 %v1200_v4 }
  0xc4   :  { %1080 = vmatpush3.bf16.msra.mxu1 %v1079_v6  ;;  %1155 = vmatpush3.bf16.msra.mxu0 %v1435_v0 }
  0xc5   :  { %1081 = vmatprep.subr.bf16.mxu1 %v1200_v4  ;;  %1156 = vmatprep.subr.bf16.mxu0 %v1200_v4 }
  0xc8   :  { %1083 = vmatpush3.bf16.msra.mxu1 %v1082_v34  ;;  %1158 = vmatpush3.bf16.msra.mxu0 %v1453_v47 }
  0xc9   :  { %1084 = vmatprep.subr.bf16.mxu1 %v1200_v4 }
  0xcb   :  { %1013 = vmatmul.mubr.msk.f32.vlgmr.msra.gmra.mrb[0].mxu0 %vm24_vm2, %v1203_v63 }
  0xcc   :  { %1086 = vmatpush3.bf16.msra.mxu1 %v1085_v15 }
  0xcf   :  { %908 = vmatmul.mubr.f32.vlgmr.msra.gmra.mrb[0].mxu1 %v1497_v11 }
 0x19e   :  { %v680_v20 = vpop.f32.mrb[0].mxu0 }
 0x19f   :  { %v1014_v22 = vpop.f32.mrb[1].mxu0 }
 0x1a2   :  { %v385_v26 = vpop.f32.mrb[0].mxu1 }
 0x1a3   :  { %v1159_v27 = vadd.f32 %v680_v20, %v385_v26  ;;  %v909_v28 = vpop.f32.mrb[1].mxu1 }
 0x1a5   :  { %684 = vst [vmem:[#allocation2] sm:$0xff] %v1159_v27 }
 0x1a6   :  { %1186 = shalt.err (!%p1183_p4)
}
 0x1a7   :  { %s1187_s21 = scalar_lea.hbm %s1604_s3, 128 }
 0x1a8   :  { %p1188_p5 = scmp.ne.s32.totalorder %s1604_s3, %s1187_s21  ;;  %p1191_p6 = scmp.lt.u32.totalorder %s1187_s21, %s1604_s3 }
 0x1aa   :  { %p1193_p7 = pnand %p1191_p6, %p1188_p5 }
 0x1ac   :  { %1196 = shalt.err (!%p1193_p7)
}
 0x1ad   :  { %694 = dma.vmem_to_hbm [thread:$0]  %s692_s19, 128, %s1604_s3, [#allocation3]  }
 0x1ae   :  { %1197 = dma.done.wait [#allocation3], 128  }
 0x1af   :  { %1198 = vsyncadd [#allocation3], 4294967168 }
 0x1b0   :  { %698 = vsyncpa [#allocation3], 1 }

</bundles_post_ra>
